<compile_context>
chip_gen: v7x
topology: tpu7x:2x2x1
jax: 0.10.0
libtpu: 0.0.40
codegen_flags: <defaults>
</compile_context>

<pallas_src>
import functools
import math

import numpy as np

import jax
import jax.numpy as jnp
from jax import lax
from jax.experimental import pallas as pl
from jax.experimental.pallas import tpu as pltpu


# ----------------------------------------------------------------------------
# Trace-time (numpy) constants: Gaussian taps and conv-as-matmul operators.
# ----------------------------------------------------------------------------

def _gaussian_taps(window_size: int, sigma: float) -> np.ndarray:
    """Same construction as PyTorch `gaussian(window_size, sigma)`."""
    xs = np.arange(window_size, dtype=np.float64)
    g = np.exp(-((xs - window_size // 2) ** 2) / (2.0 * sigma ** 2))
    g = g / g.sum()
    return g.astype(np.float32)


def _conv_matrix(n: int, taps: np.ndarray) -> np.ndarray:
    """Banded Toeplitz M with (M @ x)[i] = sum_k taps[k] * x[i + k - pad],
    x treated as zero outside [0, n) -- exactly F.conv2d's zero-padded
    cross-correlation along one axis."""
    ws = taps.shape[0]
    pad = ws // 2
    m = np.zeros((n, n), dtype=np.float32)
    for i in range(n):
        for k in range(ws):
            j = i + k - pad
            if 0 <= j < n:
                m[i, j] = taps[k]
    return m


def _row_operator(w: int, w_pad: int, taps: np.ndarray, pp: int) -> np.ndarray:
    """Block-diagonal right-multiply operator for the row (W) pass.

    Each (w_pad, w_pad) diagonal block applies the width-`w` zero-padded conv
    to the first `w` lanes of a plane slab and emits exact zeros on the padded
    lanes, so planes never mix and the zero padding is exact."""
    blk = np.zeros((w_pad, w_pad), dtype=np.float32)
    blk[:w, :w] = _conv_matrix(w, taps).T
    lg = pp * w_pad
    out = np.zeros((lg, lg), dtype=np.float32)
    for p in range(pp):
        out[p * w_pad:(p + 1) * w_pad, p * w_pad:(p + 1) * w_pad] = blk
    return out


def _choose_packing(n_planes: int, w: int, lg_cap: int = 256):
    """Pick (planes_per_step, padded plane width) so each grid step owns a
    lane slab Lg = pp * w_pad that is a multiple of 128 (or the whole lane
    extent), with Lg <= lg_cap whenever more than one plane is packed.

    Preference: no W padding > at least 2 grid steps (megacore) > larger
    slab.  pp == 1 (single plane, W padded to a multiple of 128) is always a
    valid fallback, so awkward shapes can no longer blow up the row operator
    or VMEM."""
    candidates = []
    for pp in range(1, n_planes + 1):
        if n_planes % pp:
            continue
        m = 128 // math.gcd(pp, 128)          # w_pad granularity for alignment
        w_pad = ((w + m - 1) // m) * m
        lg = pp * w_pad
        if lg > lg_cap and pp > 1:
            continue                          # keep the block-diag operator small
        g = n_planes // pp
        pad_frac = (w_pad - w) / w_pad
        candidates.append((pad_frac, 0 if g >= 2 else 1, -lg, pp, w_pad))
    candidates.sort()
    _, _, _, pp, w_pad = candidates[0]
    return pp, w_pad


# ----------------------------------------------------------------------------
# Kernel: one lane-dense slab of packed (b, c) planes per grid step.
# ----------------------------------------------------------------------------

def _ssim_kernel(x1_ref, x2_ref, mh_ref, bw_ref, o_ref, *, w, w_pad):
    h, lg = x1_ref.shape
    x1 = x1_ref[...]            # (H, Lg) f32
    x2 = x2_ref[...]            # (H, Lg) f32

    # ---- Fused column pass (Gaussian conv along H): ONE MXU matmul over all
    #      five moment planes concatenated along the lane axis.
    xcat = jnp.concatenate([x1, x2, x1 * x1, x2 * x2, x1 * x2], axis=1)
    tcat = jnp.dot(mh_ref[...], xcat, preferred_element_type=jnp.float32)

    # ---- Fused row pass (Gaussian conv along W): restack the five column
    #      pass results along the sublane axis (lane-aligned slices, cheap
    #      copies) -> ONE MXU matmul against the capped block-diag operator.
    tstk = jnp.concatenate(
        [tcat[:, i * lg:(i + 1) * lg] for i in range(5)], axis=0)   # (5H, Lg)
    r = jnp.dot(tstk, bw_ref[...], preferred_element_type=jnp.float32)

    # Sigma terms formed straight from the fused result (few live arrays).
    mu1 = r[0:h]
    mu2 = r[h:2 * h]
    mu1_sq = mu1 * mu1
    mu2_sq = mu2 * mu2
    mu1_mu2 = mu1 * mu2
    sigma1_sq = r[2 * h:3 * h] - mu1_sq
    sigma2_sq = r[3 * h:4 * h] - mu2_sq
    sigma12 = r[4 * h:5 * h] - mu1_mu2

    c1 = 0.01 ** 2
    c2 = 0.03 ** 2
    num = (2.0 * mu1_mu2 + c1) * (2.0 * sigma12 + c2)
    den = (mu1_sq + mu2_sq + c1) * (sigma1_sq + sigma2_sq + c2)
    # den >= c1*c2 > 0; approx reciprocal runs on the otherwise-idle EUP slot.
    ssim_map = num * pl.reciprocal(den, approx=True)

    if w_pad != w:
        # Zero-padded lanes produce ssim == 1 exactly; mask them out of the sum.
        lane = lax.broadcasted_iota(jnp.int32, (h, lg), 1)
        ssim_map = jnp.where((lane % w_pad) < w, ssim_map, 0.0)

    # Sublane-only reduce in-kernel; lane-dense (1, Lg) partial row out.
    o_ref[0] = jnp.sum(ssim_map, axis=0, keepdims=True)


# ----------------------------------------------------------------------------
# Wrapper
# ----------------------------------------------------------------------------

@functools.partial(jax.jit, static_argnames=("window_size", "size_average"))
def ssim_metric(img1, img2, window_size: int = 11, size_average: bool = True):
    """SSIMMetric.forward (size_average=True is the module default)."""
    B, C, H, W = img1.shape
    N = B * C
    taps = _gaussian_taps(window_size, 1.5)

    pp, w_pad = _choose_packing(N, W)
    G = N // pp
    Lg = pp * w_pad

    x1 = img1.astype(jnp.float32)
    x2 = img2.astype(jnp.float32)
    if w_pad != W:
        pad = ((0, 0), (0, 0), (0, 0), (0, w_pad - W))
        x1 = jnp.pad(x1, pad)
        x2 = jnp.pad(x2, pad)

    # Lane-dense packing: (B, C, H, W_pad) -> (H, N * W_pad); each (b, c)
    # plane owns a contiguous w_pad-wide slab of lanes.
    # TODO(synk): when W % 128 == 0 the transpose can be skipped entirely
    # (natural (N*H, W) layout + per-plane column pass), saving one HBM
    # round-trip of both images before the kernel.
    x1 = jnp.transpose(x1, (2, 0, 1, 3)).reshape(H, N * w_pad)
    x2 = jnp.transpose(x2, (2, 0, 1, 3)).reshape(H, N * w_pad)

    mh = jnp.asarray(_conv_matrix(H, taps))               # (H, H)  column pass
    bw = jnp.asarray(_row_operator(W, w_pad, taps, pp))   # (Lg, Lg) row pass

    kernel = functools.partial(_ssim_kernel, w=W, w_pad=w_pad)

    grid_spec = pltpu.PrefetchScalarGridSpec(
        num_scalar_prefetch=0,
        grid=(G,),
        in_specs=[
            pl.BlockSpec((H, Lg), lambda g: (0, g)),
            pl.BlockSpec((H, Lg), lambda g: (0, g)),
            # Grid-invariant operators; the Lg cap keeps them small (<= 256 KiB)
            # so default double-buffering is cheap.
            # TODO(synk): single-buffer these via pipeline_mode=pl.Buffered(1)
            # if very wide single-plane slabs (large W_pad) are needed.
            pl.BlockSpec((H, H), lambda g: (0, 0)),
            pl.BlockSpec((Lg, Lg), lambda g: (0, 0)),
        ],
        # Per-step lane-dense partial rows: no shared accumulator, so the grid
        # axis can run as "parallel" (v7x megacore safe).
        out_specs=pl.BlockSpec((1, 1, Lg), lambda g: (g, 0, 0)),
    )

    partial_rows = pl.pallas_call(
        kernel,
        out_shape=jax.ShapeDtypeStruct((G, 1, Lg), jnp.float32),
        grid_spec=grid_spec,
        compiler_params=pltpu.CompilerParams(
            dimension_semantics=("parallel",),
            vmem_limit_bytes=32 * 1024 * 1024),
    )(x1, x2, mh, bw)

    if size_average:
        return jnp.sum(partial_rows) / (B * C * H * W)     # ssim_map.mean()
    # size_average=False: per-sample means == ssim_map.mean(1).mean(1).mean(1).
    per_plane = partial_rows.reshape(G * pp, w_pad).sum(axis=1)   # (N,)
    return per_plane.reshape(B, C).sum(axis=1) / (C * H * W)


# ----------------------------------------------------------------------------
# Pure-JAX reference (semantically matching the PyTorch module) and self-test.
# ----------------------------------------------------------------------------

def _ssim_reference(img1, img2, window_size: int = 11):
    B, C, H, W = img1.shape
    g = _gaussian_taps(window_size, 1.5)
    win2d = jnp.asarray(np.outer(g, g), dtype=jnp.float32)
    w = jnp.broadcast_to(win2d[None, None], (C, 1, window_size, window_size))
    conv = lambda x: lax.conv_general_dilated(
        x, w, window_strides=(1, 1), padding="SAME",
        dimension_numbers=("NCHW", "OIHW", "NCHW"),
        feature_group_count=C, precision=lax.Precision.HIGHEST)
    img1 = img1.astype(jnp.float32)
    img2 = img2.astype(jnp.float32)
    mu1, mu2 = conv(img1), conv(img2)
    mu1_sq, mu2_sq, mu1_mu2 = mu1 * mu1, mu2 * mu2, mu1 * mu2
    s1 = conv(img1 * img1) - mu1_sq
    s2 = conv(img2 * img2) - mu2_sq
    s12 = conv(img1 * img2) - mu1_mu2
    c1, c2 = 0.01 ** 2, 0.03 ** 2
    ssim_map = ((2 * mu1_mu2 + c1) * (2 * s12 + c2)) / (
        (mu1_sq + mu2_sq + c1) * (s1 + s2 + c2))
    return ssim_map.mean()


if __name__ == "__main__":
    key = jax.random.PRNGKey(0)
    k1, k2 = jax.random.split(key)
    B, C, H, W = 2, 4, 16, 16
    img1 = jax.random.uniform(k1, (B, C, H, W), dtype=jnp.float32)
    img2 = jax.random.uniform(k2, (B, C, H, W), dtype=jnp.float32)

    val = ssim_metric(img1, img2)
    jax.block_until_ready(val)

    ref = _ssim_reference(img1, img2)
    assert jnp.allclose(val, ref, atol=2e-3, rtol=2e-3), (float(val), float(ref))

    print("KERNEL_OK")
</pallas_src>

<mosaic_0001>
module attributes {stable_mosaic.version = 11 : i64} {
  func.func @_ssim_kernel(%arg0: i32, %arg1: memref<16x128xf32, #tpu.memory_space<vmem>>, %arg2: memref<16x128xf32, #tpu.memory_space<vmem>>, %arg3: memref<16x16xf32, #tpu.memory_space<vmem>>, %arg4: memref<128x128xf32, #tpu.memory_space<vmem>>, %arg5: memref<1x1x128xf32, #tpu.memory_space<vmem>>) attributes {dimension_semantics = [#tpu.dimension_semantics<parallel>], iteration_bounds = array<i64: 1>, scalar_prefetch = 0 : i64, scratch_operands = 0 : i64, tpu.core_type = #tpu.core_type<tc>, window_params = [{transform_indices = @transform_0, window_bounds = array<i64: 16, 128>}, {transform_indices = @transform_1, window_bounds = array<i64: 16, 128>}, {pipeline_mode = #tpu.pipeline_mode<synchronous>, transform_indices = @transform_2, window_bounds = array<i64: 16, 16>}, {pipeline_mode = #tpu.pipeline_mode<synchronous>, transform_indices = @transform_3, window_bounds = array<i64: 128, 128>}, {transform_indices = @transform_4, window_bounds = array<i64: 1, 1, 128>}]} {
    %c0 = arith.constant 0 : index
    %c0_0 = arith.constant 0 : index
    %0 = vector.load %arg1[%c0, %c0_0] : memref<16x128xf32, #tpu.memory_space<vmem>>, vector<16x128xf32>
    %c0_1 = arith.constant 0 : index
    %c0_2 = arith.constant 0 : index
    %1 = vector.load %arg2[%c0_1, %c0_2] : memref<16x128xf32, #tpu.memory_space<vmem>>, vector<16x128xf32>
    %2 = arith.mulf %0, %0 : vector<16x128xf32>
    %3 = arith.mulf %1, %1 : vector<16x128xf32>
    %4 = arith.mulf %0, %1 : vector<16x128xf32>
    %5 = tpu.concatenate %0, %1, %2, %3, %4 in 1 : vector<16x128xf32>, vector<16x128xf32>, vector<16x128xf32>, vector<16x128xf32>, vector<16x128xf32> -> vector<16x640xf32>
    %c0_3 = arith.constant 0 : index
    %c0_4 = arith.constant 0 : index
    %6 = vector.load %arg3[%c0_3, %c0_4] : memref<16x16xf32, #tpu.memory_space<vmem>>, vector<16x16xf32>
    %cst = arith.constant dense<0.000000e+00> : vector<16x640xf32>
    %7 = tpu.matmul %6, %5, %cst {dimension_numbers = #tpu.dot_dimension_numbers<[1], [0], [0], [1], [0, 0, 1, 1], [], []>} : vector<16x16xf32>, vector<16x640xf32>, vector<16x640xf32> -> vector<16x640xf32>
    %8 = vector.extract_strided_slice %7 {offsets = [0, 0], sizes = [16, 128], strides = [1, 1]} : vector<16x640xf32> to vector<16x128xf32>
    %9 = vector.extract_strided_slice %7 {offsets = [0, 128], sizes = [16, 128], strides = [1, 1]} : vector<16x640xf32> to vector<16x128xf32>
    %10 = vector.extract_strided_slice %7 {offsets = [0, 256], sizes = [16, 128], strides = [1, 1]} : vector<16x640xf32> to vector<16x128xf32>
    %11 = vector.extract_strided_slice %7 {offsets = [0, 384], sizes = [16, 128], strides = [1, 1]} : vector<16x640xf32> to vector<16x128xf32>
    %12 = vector.extract_strided_slice %7 {offsets = [0, 512], sizes = [16, 128], strides = [1, 1]} : vector<16x640xf32> to vector<16x128xf32>
    %13 = tpu.concatenate %8, %9, %10, %11, %12 in 0 : vector<16x128xf32>, vector<16x128xf32>, vector<16x128xf32>, vector<16x128xf32>, vector<16x128xf32> -> vector<80x128xf32>
    %c0_5 = arith.constant 0 : index
    %c0_6 = arith.constant 0 : index
    %14 = vector.load %arg4[%c0_5, %c0_6] : memref<128x128xf32, #tpu.memory_space<vmem>>, vector<128x128xf32>
    %cst_7 = arith.constant dense<0.000000e+00> : vector<80x128xf32>
    %15 = tpu.matmul %13, %14, %cst_7 {dimension_numbers = #tpu.dot_dimension_numbers<[1], [0], [0], [1], [0, 0, 1, 1], [], []>} : vector<80x128xf32>, vector<128x128xf32>, vector<80x128xf32> -> vector<80x128xf32>
    %16 = vector.extract_strided_slice %15 {offsets = [0, 0], sizes = [16, 128], strides = [1, 1]} : vector<80x128xf32> to vector<16x128xf32>
    %17 = vector.extract_strided_slice %15 {offsets = [16, 0], sizes = [16, 128], strides = [1, 1]} : vector<80x128xf32> to vector<16x128xf32>
    %18 = arith.mulf %16, %16 : vector<16x128xf32>
    %19 = arith.mulf %17, %17 : vector<16x128xf32>
    %20 = arith.mulf %16, %17 : vector<16x128xf32>
    %21 = vector.extract_strided_slice %15 {offsets = [32, 0], sizes = [16, 128], strides = [1, 1]} : vector<80x128xf32> to vector<16x128xf32>
    %22 = arith.subf %21, %18 : vector<16x128xf32>
    %23 = vector.extract_strided_slice %15 {offsets = [48, 0], sizes = [16, 128], strides = [1, 1]} : vector<80x128xf32> to vector<16x128xf32>
    %24 = arith.subf %23, %19 : vector<16x128xf32>
    %25 = vector.extract_strided_slice %15 {offsets = [64, 0], sizes = [16, 128], strides = [1, 1]} : vector<80x128xf32> to vector<16x128xf32>
    %26 = arith.subf %25, %20 : vector<16x128xf32>
    %cst_8 = arith.constant 2.000000e+00 : f32
    %27 = vector.broadcast %cst_8 : f32 to vector<16x128xf32>
    %28 = arith.mulf %27, %20 : vector<16x128xf32>
    %cst_9 = arith.constant 9.99999974E-5 : f32
    %29 = vector.broadcast %cst_9 : f32 to vector<16x128xf32>
    %30 = arith.addf %28, %29 : vector<16x128xf32>
    %cst_10 = arith.constant 2.000000e+00 : f32
    %31 = vector.broadcast %cst_10 : f32 to vector<16x128xf32>
    %32 = arith.mulf %31, %26 : vector<16x128xf32>
    %cst_11 = arith.constant 8.99999984E-4 : f32
    %33 = vector.broadcast %cst_11 : f32 to vector<16x128xf32>
    %34 = arith.addf %32, %33 : vector<16x128xf32>
    %35 = arith.mulf %30, %34 : vector<16x128xf32>
    %36 = arith.addf %18, %19 : vector<16x128xf32>
    %cst_12 = arith.constant 9.99999974E-5 : f32
    %37 = vector.broadcast %cst_12 : f32 to vector<16x128xf32>
    %38 = arith.addf %36, %37 : vector<16x128xf32>
    %39 = arith.addf %22, %24 : vector<16x128xf32>
    %cst_13 = arith.constant 8.99999984E-4 : f32
    %40 = vector.broadcast %cst_13 : f32 to vector<16x128xf32>
    %41 = arith.addf %39, %40 : vector<16x128xf32>
    %42 = arith.mulf %38, %41 : vector<16x128xf32>
    %43 = tpu.reciprocal %42 {approx = true} : vector<16x128xf32> -> vector<16x128xf32>
    %44 = arith.mulf %35, %43 : vector<16x128xf32>
    %cst_14 = arith.constant dense<0.000000e+00> : vector<128xf32>
    %45 = vector.multi_reduction <add>, %44, %cst_14 [0] : vector<16x128xf32> to vector<128xf32>
    %46 = vector.shape_cast %45 : vector<128xf32> to vector<1x128xf32>
    %c0_15 = arith.constant 0 : index
    %c0_16 = arith.constant 0 : index
    %c0_17 = arith.constant 0 : index
    %47 = vector.load %arg5[%c0_15, %c0_16, %c0_17] : memref<1x1x128xf32, #tpu.memory_space<vmem>>, vector<1x1x128xf32>
    %48 = vector.shape_cast %47 : vector<1x1x128xf32> to vector<1x128xf32>
    %49 = vector.shape_cast %46 : vector<1x128xf32> to vector<1x1x128xf32>
    tpu.vector_store %arg5[%c0_15, %c0_16, %c0_17], %49 {strides = array<i32>} : memref<1x1x128xf32, #tpu.memory_space<vmem>>, vector<1x1x128xf32>,
    return
  }
  func.func @transform_0(%arg0: i32) -> (i32, i32) {
    %c0_i32 = arith.constant 0 : i32
    %c0_i32_0 = arith.constant 0 : i32
    return %c0_i32, %arg0 : i32, i32
  }
  func.func @transform_1(%arg0: i32) -> (i32, i32) {
    %c0_i32 = arith.constant 0 : i32
    %c0_i32_0 = arith.constant 0 : i32
    return %c0_i32, %arg0 : i32, i32
  }
  func.func @transform_2(%arg0: i32) -> (i32, i32) {
    %c0_i32 = arith.constant 0 : i32
    %c0_i32_0 = arith.constant 0 : i32
    %c0_i32_1 = arith.constant 0 : i32
    return %c0_i32, %c0_i32_0 : i32, i32
  }
  func.func @transform_3(%arg0: i32) -> (i32, i32) {
    %c0_i32 = arith.constant 0 : i32
    %c0_i32_0 = arith.constant 0 : i32
    %c0_i32_1 = arith.constant 0 : i32
    return %c0_i32, %c0_i32_0 : i32, i32
  }
  func.func @transform_4(%arg0: i32) -> (i32, i32, i32) {
    %c0_i32 = arith.constant 0 : i32
    %c0_i32_0 = arith.constant 0 : i32
    %c0_i32_1 = arith.constant 0 : i32
    return %arg0, %c0_i32, %c0_i32_0 : i32, i32, i32
  }
}

</mosaic_0001>

<bundles_post_ra>
// kernel: ssim_metric.1
= control target key start
LH: loop header
LB: loop body
LE: loop exit
PB: predicated region body
PF: predicated region fallthrough
CT: control target
= control target key end

     0   :  { %v583_v3 = vmov 0.0   ;;  %vm29_vm0 = vcmask 130048   ;;  %s684_s1 = inlined_call_operand.vmem [shape: f32[16,128], index: 1, kind: input, shape index: {}]   ;;  %s685_s0 = inlined_call_operand.vmem [shape: f32[16,128], index: 0, kind: input, shape index: {}]   ;;  %s686_s3 = inlined_call_operand.vmem [shape: f32[128,128], index: 3, kind: input, shape index: {}]   ;;  %s687_s2 = inlined_call_operand.vmem [shape: f32[16,16], index: 2, kind: input, shape index: {}]   ;;  %s688_s4 = inlined_call_operand.vmem [shape: f32[1,1,128], index: 4, kind: output, shape index: {}]  }
   0x1   :  { %v19_v0 = vld [vmem:[%s684_s1] sm:$0xff]  ;;  %v20_v1 = vld [vmem:[%s684_s1 + $0x8] sm:$0xff]  ;;  %100 = vmatprep.mubr.f32.mxu0 %v583_v3  ;;  %v267_v15 = vld [vmem:[%s686_s3 + $0x10] sm:$0xff] }
   0x2   :  { %v17_v2 = vld [vmem:[%s685_s0] sm:$0xff]  ;;  %v23_v4 = vmul.f32 %v19_v0, %v19_v0  ;;  %v24_v5 = vmul.f32 %v20_v1, %v20_v1  ;;  %v534_v6 = vpack.c.bf16 %v20_v1, %v19_v0  ;;  %v18_v7 = vld [vmem:[%s685_s0 + $0x8] sm:$0xff]  ;;  %v268_v18 = vld [vmem:[%s686_s3 + $0x18] sm:$0xff] }
   0x3   :  { %v21_v8 = vmul.f32 %v17_v2, %v17_v2  ;;  %v22_v9 = vmul.f32 %v18_v7, %v18_v7  ;;  %v536_v10 = vpack.c.bf16 %v18_v7, %v17_v2  ;;  %v25_v11 = vmul.f32 %v19_v0, %v17_v2  ;;  %v265_v13 = vld [vmem:[%s686_s3] sm:$0xff]  ;;  %v266_v14 = vld [vmem:[%s686_s3 + $0x8] sm:$0xff]  ;;  %v271_v27 = vld [vmem:[%s686_s3 + $0x30] sm:$0xff] }
   0x4   :  { %v26_v12 = vmul.f32 %v20_v1, %v18_v7  ;;  %535 = vmatprep.subr.bf16.mxu0 %v534_v6  ;;  %v538_v16 = vpack.c.bf16 %v24_v5, %v23_v4  ;;  %v546_v17 = vpack.c.bf16 %v266_v14, %v265_v13  ;;  %v27_v19 = vld [vmem:[%s687_s2] sm:$0xff]  ;;  %v550_v21 = vpack.c.bf16 %v268_v18, %v267_v15  ;;  %v270_v23 = vld [vmem:[%s686_s3 + $0x28] sm:$0xff]  ;;  %v272_v28 = vld [vmem:[%s686_s3 + $0x38] sm:$0xff] }
   0x5   :  { %537 = vmatpush1.bf16.msra.mxu0 %v536_v10  ;;  %v540_v20 = vpack.c.bf16 %v22_v9, %v21_v8  ;;  %v269_v22 = vld [vmem:[%s686_s3 + $0x20] sm:$0xff]  ;;  %v28_v26 = vld [vmem:[%s687_s2 + $0x8] sm:$0xff]  ;;  %v558_v29 = vpack.c.bf16 %v272_v28, %v271_v27  ;;  %v275_v33 = vld [vmem:[%s686_s3 + $0x50] sm:$0xff] }
   0x6   :  { %539 = vmatprep.subr.bf16.mxu0 %v538_v16  ;;  %v542_v24 = vpack.c.bf16 %v26_v12, %v25_v11  ;;  %547 = vmatprep.subr.bf16.mxu1 %v546_v17  ;;  %v554_v25 = vpack.c.bf16 %v270_v23, %v269_v22  ;;  %v273_v30 = vld [vmem:[%s686_s3 + $0x40] sm:$0xff]  ;;  %v274_v31 = vld [vmem:[%s686_s3 + $0x48] sm:$0xff]  ;;  %v276_v34 = vld [vmem:[%s686_s3 + $0x58] sm:$0xff] }
   0x7   :  { %549 = vmatpush3.bf16.msra.mxu1 %v546_v17  ;;  %v562_v32 = vpack.c.bf16 %v274_v31, %v273_v30  ;;  %v566_v35 = vpack.c.bf16 %v276_v34, %v275_v33  ;;  %v277_v36 = vld [vmem:[%s686_s3 + $0x60] sm:$0xff]  ;;  %v278_v37 = vld [vmem:[%s686_s3 + $0x68] sm:$0xff]  ;;  %v279_v39 = vld [vmem:[%s686_s3 + $0x70] sm:$0xff] }
   0x8   :  { %444 = vmatmul.mubr.msk.f32.vlgmr.msra.gmra.mrb[0].mxu0 %vm29_vm0, %v27_v19  ;;  %551 = vmatprep.subr.bf16.mxu1 %v550_v21  ;;  %v570_v38 = vpack.c.bf16 %v278_v37, %v277_v36  ;;  %v280_v40 = vld [vmem:[%s686_s3 + $0x78] sm:$0xff] }
   0x9   :  { %541 = vmatpush1.bf16.msra.mxu0 %v540_v20  ;;  %106 = vmatprep.mubr.f32.mxu0 %v583_v3  ;;  %v574_v41 = vpack.c.bf16 %v280_v40, %v279_v39 }
   0xa   :  { %543 = vmatprep.subr.bf16.mxu0 %v542_v24 }
   0xb   :  { %553 = vmatpush3.bf16.msra.mxu1 %v550_v21 }
   0xc   :  { %445 = vmatmul.mubr.msk.f32.gmra.mrb[2].mxu0 %vm29_vm0, %v28_v26  ;;  %555 = vmatprep.subr.bf16.mxu1 %v554_v25 }
   0xd   :  { %177 = vmatprep.mubr.f32.mxu0 %v583_v3 }
   0xf   :  { %557 = vmatpush3.bf16.msra.mxu1 %v554_v25 }
  0x10   :  { %446 = vmatmul.mubr.msk.f32.vlgmr.msra.gmra.mrb[4].mxu0 %vm29_vm0, %v27_v19  ;;  %559 = vmatprep.subr.bf16.mxu1 %v558_v29 }
  0x11   :  { %183 = vmatprep.mubr.f32.mxu0 %v583_v3  ;;  %545 = vmatpush3.bf16.msra.mxu0 %v542_v24 }
  0x13   :  { %561 = vmatpush3.bf16.msra.mxu1 %v558_v29 }
  0x14   :  { %447 = vmatmul.mubr.msk.f32.gmra.mrb[6].mxu0 %vm29_vm0, %v28_v26  ;;  %563 = vmatprep.subr.bf16.mxu1 %v562_v32 }
  0x15   :  { %484 = vmatprep.mubr.msk.f32.mxu0 %vm29_vm0, %v27_v19 }
  0x17   :  { %565 = vmatpush3.bf16.msra.mxu1 %v562_v32 }
  0x18   :  { %485 = vmatmul.mubr.msk.f32.vlgmr.msra.gmra.mrb[8].mxu0 %vm29_vm0, %v28_v26  ;;  %567 = vmatprep.subr.bf16.mxu1 %v566_v35 }
  0x1b   :  { %569 = vmatpush3.bf16.msra.mxu1 %v566_v35 }
  0x1c   :  { %571 = vmatprep.subr.bf16.mxu1 %v570_v38 }
  0x1f   :  { %573 = vmatpush3.bf16.msra.mxu1 %v570_v38 }
  0x20   :  { %575 = vmatprep.subr.bf16.mxu1 %v574_v41 }
  0x23   :  { %577 = vmatpush3.bf16.msra.mxu1 %v574_v41 }
  0xdb   :  { %v102_v42 = vpop.f32.mrb[0].mxu0 }
  0xdc   :  { %v104_v43 = vpop.f32.mrb[1].mxu0  ;;  %519 = vmatprep.mubr.f32.mxu1 %v102_v42 }
  0xdf   :  { %v108_v44 = vpop.f32.mrb[2].mxu0 }
  0xe0   :  { %v110_v45 = vpop.f32.mrb[3].mxu0  ;;  %520 = vmatmul.mubr.f32.vlgmr.msra.gmra.mrb[0].mxu1 %v108_v44 }
  0xe1   :  { %522 = vmatprep.mubr.f32.mxu1 %v104_v43 }
  0xe3   :  { %v179_v46 = vpop.f32.mrb[4].mxu0 }
  0xe4   :  { %v181_v47 = vpop.f32.mrb[5].mxu0  ;;  %523 = vmatmul.mubr.f32.gmra.mrb[2].mxu1 %v110_v45 }
  0xe5   :  { %525 = vmatprep.mubr.f32.mxu1 %v179_v46 }
  0xe7   :  { %v185_v48 = vpop.f32.mrb[6].mxu0 }
  0xe8   :  { %v187_v49 = vpop.f32.mrb[7].mxu0  ;;  %526 = vmatmul.mubr.f32.gmra.mrb[4].mxu1 %v185_v48 }
  0xe9   :  { %528 = vmatprep.mubr.f32.mxu1 %v181_v47 }
  0xeb   :  { %v486_v50 = vpop.f32.mrb[8].mxu0 }
  0xec   :  { %529 = vmatmul.mubr.f32.gmra.mrb[6].mxu1 %v187_v49  ;;  %v256_v51 = vpop.f32.mrb[9].mxu0 }
  0xed   :  { %531 = vmatprep.mubr.f32.mxu1 %v256_v51 }
  0xf0   :  { %532 = vmatmul.mubr.f32.gmra.mrb[8].mxu1 %v486_v50 }
 0x1b3   :  { %v521_v52 = vpop.f32.mrb[0].mxu1 }
 0x1b4   :  { %v347_v53 = vpop.f32.mrb[1].mxu1  ;;  %v397_v55 = vmul.f32 %v521_v52, %v521_v52 }
 0x1b5   :  { %v396_v59 = vmul.f32 %v347_v53, %v347_v53 }
 0x1b7   :  { %v524_v54 = vpop.f32.mrb[2].mxu1 }
 0x1b8   :  { %v399_v56 = vmul.f32 %v524_v54, %v524_v54  ;;  %v401_v57 = vmul.f32 %v524_v54, %v521_v52  ;;  %v357_v58 = vpop.f32.mrb[3].mxu1 }
 0x1b9   :  { %v398_v60 = vmul.f32 %v357_v58, %v357_v58  ;;  %v400_v61 = vmul.f32 %v357_v58, %v347_v53 }
 0x1ba   :  { %v419_v62 = vadd.f32 %v399_v56, %v397_v55  ;;  %v409_v11 = vmul.f32 2.0, %v401_v57 }
 0x1bb   :  { %v418_v63 = vadd.f32 %v398_v60, %v396_v59  ;;  %v527_v0 = vpop.f32.mrb[4].mxu1  ;;  %v408_v16 = vmul.f32 2.0, %v400_v61 }
 0x1bc   :  { %v403_v1 = vsub.f32 %v527_v0, %v397_v55  ;;  %v367_v2 = vpop.f32.mrb[5].mxu1  ;;  %v421_v12 = vadd.f32 0.0001, %v419_v62  ;;  %v411_v24 = vadd.f32 0.0001, %v409_v11 }
 0x1bd   :  { %v402_v3 = vsub.f32 %v367_v2, %v396_v59  ;;  %v420_v17 = vadd.f32 0.0001, %v418_v63  ;;  %v410_v26 = vadd.f32 0.0001, %v408_v16 }
 0x1bf   :  { %v530_v4 = vpop.f32.mrb[6].mxu1 }
 0x1c0   :  { %v405_v5 = vsub.f32 %v530_v4, %v399_v56  ;;  %v377_v6 = vpop.f32.mrb[7].mxu1 }
 0x1c1   :  { %v404_v7 = vsub.f32 %v377_v6, %v398_v60 }
 0x1c2   :  { %v423_v8 = vadd.f32 %v405_v5, %v403_v1 }
 0x1c3   :  { %v422_v9 = vadd.f32 %v404_v7, %v402_v3  ;;  %v533_v10 = vpop.f32.mrb[8].mxu1 }
 0x1c4   :  { %v425_v13 = vadd.f32 0.0009, %v423_v8  ;;  %v407_v14 = vsub.f32 %v533_v10, %v401_v57  ;;  %v387_v15 = vpop.f32.mrb[9].mxu1 }
 0x1c5   :  { %v424_v18 = vadd.f32 0.0009, %v422_v9  ;;  %v406_v19 = vsub.f32 %v387_v15, %v400_v61 }
 0x1c6   :  { %v427_v20 = vmul.f32 %v425_v13, %v421_v12  ;;  %v413_v21 = vmul.f32 2.0, %v407_v14 }
 0x1c7   :  { %v426_v22 = vmul.f32 %v424_v18, %v420_v17  ;;  %v412_v23 = vmul.f32 2.0, %v406_v19 }
 0x1c8   :  { %579 = vrcp.f32 %v427_v20  ;;  %v415_v25 = vadd.f32 0.0009, %v413_v21 }
 0x1c9   :  { %581 = vrcp.f32 %v426_v22  ;;  %v414_v27 = vadd.f32 0.0009, %v412_v23 }
 0x1ca   :  { %v417_v28 = vmul.f32 %v415_v25, %v411_v24 }
 0x1cb   :  { %v416_v29 = vmul.f32 %v414_v27, %v410_v26 }
 0x1d2   :  { %v580_v30 = vpop.eup %579 }
 0x1d3   :  { %v582_v31 = vpop.eup %581  ;;  %v431_v32 = vmul.f32 %v580_v30, %v417_v28 }
 0x1d4   :  { %v430_v33 = vmul.f32 %v582_v31, %v416_v29 }
 0x1d6   :  { %v432_v34 = vadd.f32 %v431_v32, %v430_v33 }
 0x1d8   :  { %v433_v35 = vrot.slane %v432_v34, 4 }
 0x1da   :  { %v434_v36 = vadd.f32 %v433_v35, %v432_v34 }
 0x1dc   :  { %v435_v37 = vrot.slane %v434_v36, 2 }
 0x1de   :  { %v436_v38 = vadd.f32 %v435_v37, %v434_v36 }
 0x1e0   :  { %v437_v39 = vrot.slane %v436_v38, 1 }
 0x1e2   :  { %v438_v40 = vadd.f32 %v437_v39, %v436_v38 }
 0x1e4   :  { %439 = vst [vmem:[%s688_s4] sm:$0x1] %v438_v40 }

</bundles_post_ra>
